<compile_context>
chip_gen: v7x
topology: tpu7x:2x2x1
jax: 0.10.0
libtpu: 0.0.40
codegen_flags: <defaults>
</compile_context>

<pallas_src>
from math import ceil
from functools import partial

import jax
import jax.numpy as jnp
from jax.experimental import pallas as pl
from jax.experimental.pallas import tpu as pltpu


# ----------------------------------------------------------------------------
# crop helpers (mirror Pangu's crop_pad_3d / crop_pad_2d: symmetric padding is
# removed so the un-patched output matches img_shape exactly).
# NOTE: assumes the matching PatchEmbed used symmetric padding (left = pad//2);
# if the embed pads only at the trailing edge, change `left` accordingly.
# ----------------------------------------------------------------------------
def _crop_slices(img_dims, patch_dims):
    slices = []
    for s, p in zip(img_dims, patch_dims):
        padded = ceil(s / p) * p
        pad = padded - s
        left = pad // 2
        slices.append(slice(left, left + s))
    return tuple(slices)


def crop_pad_3d(img_shape, patch_size):
    return _crop_slices(img_shape, patch_size)


def crop_pad_2d(img_shape, patch_size):
    return _crop_slices(img_shape, patch_size)


def _round_up(x, m):
    return ((x + m - 1) // m) * m


# ----------------------------------------------------------------------------
# Pallas kernel: tiled  Y = X @ W + b  (the ConvTranspose hot path)
# ----------------------------------------------------------------------------
def matmul_bias_kernel(x_ref, w_ref, b_ref, o_ref):
    acc = jnp.dot(x_ref[...], w_ref[...], preferred_element_type=jnp.float32)
    o_ref[...] = (acc + b_ref[...]).astype(o_ref.dtype)


def matmul_bias(x, w, b, *, tm=512, compute_dtype=jnp.bfloat16, out_dtype=None):
    """y = x @ w + b, tiled over rows (tokens) on the MXU.

    x: (M, K), w: (K, N), b: (N,)  ->  (M, N) in `out_dtype`.
    """
    M, K = x.shape
    Kw, N = w.shape
    assert K == Kw and b.shape == (N,)
    if out_dtype is None:
        out_dtype = x.dtype

    # Lane-dense output: pad N to a multiple of 128 with zero columns.
    Np = _round_up(N, 128)
    if Np != N:
        w = jnp.pad(w, ((0, 0), (0, Np - N)))
        b = jnp.pad(b, (0, Np - N))

    # MXU-aligned row tile; clamp for small problems (tm must stay a multiple
    # of 8 for the (8,128) block constraint).
    tm_eff = min(tm, _round_up(M, 8))
    # Prefer >=2 grid steps for big problems so the "parallel" M axis can
    # shard across v7x's two TensorCores.
    if M >= 512 and -(-M // tm_eff) == 1:
        tm_eff = _round_up(-(-M // 2), 256)
    grid_m = pl.cdiv(M, tm_eff)

    xc = x.astype(compute_dtype)
    wc = w.astype(compute_dtype)
    bc = b.reshape(1, Np).astype(jnp.float32)

    bytes_accessed = int(
        M * K * xc.dtype.itemsize
        + K * Np * wc.dtype.itemsize
        + Np * 4
        + M * Np * jnp.dtype(out_dtype).itemsize
    )

    out = pl.pallas_call(
        matmul_bias_kernel,
        out_shape=jax.ShapeDtypeStruct((M, Np), out_dtype),
        grid_spec=pltpu.PrefetchScalarGridSpec(
            num_scalar_prefetch=0,
            grid=(grid_m,),
            in_specs=[
                # activations stream block-by-block over the row grid
                pl.BlockSpec((tm_eff, K), lambda i: (i, 0)),
                # weight / bias: constant block index -> DMA'd once, resident
                # across all grid steps (no per-step re-copy).
                pl.BlockSpec((K, Np), lambda i: (0, 0)),
                pl.BlockSpec((1, Np), lambda i: (0, 0)),
            ],
            out_specs=pl.BlockSpec((tm_eff, Np), lambda i: (i, 0)),
        ),
        compiler_params=pltpu.CompilerParams(
            dimension_semantics=("parallel",),
        ),
        cost_estimate=pl.CostEstimate(
            flops=2 * M * K * Np,
            transcendentals=0,
            bytes_accessed=bytes_accessed,
        ),
    )(xc, wc, bc)

    return out[:, :N] if Np != N else out


# ----------------------------------------------------------------------------
# PatchRecovery forward (matmul in Pallas; scatter/crop glue in XLA)
# ----------------------------------------------------------------------------
def patch_recovery_forward(x, w_up, b_up, w_sf, b_sf,
                           img_shape, inp_shape, patch_size,
                           *, tm=512, compute_dtype=jnp.bfloat16):
    B, L, dim = x.shape
    inp_Z, inp_H, inp_W = inp_shape
    pZ, pH, pW = patch_size
    Cu = w_up.shape[1]
    Cs = w_sf.shape[1]
    assert L == inp_Z * inp_H * inp_W
    out_dtype = x.dtype

    # tokens, channel-last
    x5 = x.reshape(B, inp_Z, inp_H, inp_W, dim)
    Zp = inp_Z - 1
    x_up = x5[:, :-1].reshape(-1, dim)        # (B*(inp_Z-1)*inp_H*inp_W, dim)
    x_sf = x5[:, -1].reshape(-1, dim)         # (B*inp_H*inp_W, dim)

    # Flatten ConvTranspose weights with column order (kz, kh, kw, c): the
    # post-kernel scatter then keeps contiguous minor runs (cheaper transpose
    # than the (c, kz, kh, kw) order).
    # torch ConvTranspose3d weight: (in=dim, out=Cu, pZ, pH, pW)
    Wu = jnp.transpose(w_up, (0, 2, 3, 4, 1)).reshape(dim, pZ * pH * pW * Cu)
    bu = jnp.tile(b_up, pZ * pH * pW)
    # torch ConvTranspose2d weight: (in=dim, out=Cs, pH, pW)
    Ws = jnp.transpose(w_sf, (0, 2, 3, 1)).reshape(dim, pH * pW * Cs)
    bs = jnp.tile(b_sf, pH * pW)

    # MXU matmuls; outputs kept in the (bf16) compute dtype so the scatter
    # below moves half the HBM bytes. Accumulation + bias add are f32.
    yu = matmul_bias(x_up, Wu, bu, tm=tm,
                     compute_dtype=compute_dtype, out_dtype=compute_dtype)
    ys = matmul_bias(x_sf, Ws, bs, tm=tm,
                     compute_dtype=compute_dtype, out_dtype=compute_dtype)

    # patch scatter (stride == kernel => no overlap)
    # TODO(synk): fuse this scatter into the kernel's out_spec (grid over
    # (b, z, h) token rows) to remove this extra HBM round-trip.
    yu = yu.reshape(B, Zp, inp_H, inp_W, pZ, pH, pW, Cu)
    yu = yu.transpose(0, 1, 4, 2, 5, 3, 6, 7).reshape(
        B, Zp * pZ, inp_H * pH, inp_W * pW, Cu)
    ys = ys.reshape(B, inp_H, inp_W, pH, pW, Cs)
    ys = ys.transpose(0, 1, 3, 2, 4, 5).reshape(B, inp_H * pH, inp_W * pW, Cs)

    cz, ch, cw = crop_pad_3d(img_shape, patch_size)
    ch2, cw2 = crop_pad_2d(img_shape[1:], patch_size[1:])

    out_upper = yu[:, cz, ch, cw, :].astype(out_dtype)     # (B, img_Z, img_H, img_W, Cu)
    out_surface = ys[:, ch2, cw2, :][:, None].astype(out_dtype)  # (B, 1, img_H, img_W, Cs)
    return out_upper, out_surface


if __name__ == "__main__":
    # small, self-consistent configuration
    img_shape = (5, 14, 16)       # (img_Z, img_H, img_W)
    patch_size = (2, 4, 4)        # (pZ, pH, pW)
    inp_shape = (ceil(img_shape[0] / patch_size[0]) + 1,   # +1 surface level
                 ceil(img_shape[1] / patch_size[1]),
                 ceil(img_shape[2] / patch_size[2]))       # -> (4, 4, 4)
    dim = 32
    upper_channels = 5
    surface_channels = 4
    B = 2
    L = inp_shape[0] * inp_shape[1] * inp_shape[2]

    key = jax.random.PRNGKey(0)
    k1, k2, k3, k4, k5 = jax.random.split(key, 5)
    w_up = jax.random.normal(k1, (dim, upper_channels) + patch_size, jnp.float32) * 0.02
    b_up = jax.random.normal(k2, (upper_channels,), jnp.float32) * 0.02
    w_sf = jax.random.normal(k3, (dim, surface_channels) + patch_size[1:], jnp.float32) * 0.02
    b_sf = jax.random.normal(k4, (surface_channels,), jnp.float32) * 0.02
    x = jax.random.normal(k5, (B, L, dim), jnp.float32)

    # default (bf16-streaming) fast path
    fwd = jax.jit(partial(patch_recovery_forward,
                          img_shape=img_shape, inp_shape=inp_shape,
                          patch_size=patch_size))
    out_upper, out_surface = fwd(x, w_up, b_up, w_sf, b_sf)
    jax.block_until_ready((out_upper, out_surface))

    # shapes match the PyTorch module contract
    assert out_upper.shape == (B,) + img_shape + (upper_channels,)
    assert out_surface.shape == (B, 1, img_shape[1], img_shape[2], surface_channels)

    # plain-JAX f32 reference of the same math
    def reference_forward(x):
        pZ, pH, pW = patch_size
        inp_Z, inp_H, inp_W = inp_shape
        Zp = inp_Z - 1
        x5 = x.reshape((B,) + inp_shape + (dim,))
        Wu = jnp.transpose(w_up, (0, 2, 3, 4, 1)).reshape(dim, -1)
        bu = jnp.tile(b_up, pZ * pH * pW)
        Ws = jnp.transpose(w_sf, (0, 2, 3, 1)).reshape(dim, -1)
        bs = jnp.tile(b_sf, pH * pW)
        yu = x5[:, :-1].reshape(-1, dim) @ Wu + bu
        ys = x5[:, -1].reshape(-1, dim) @ Ws + bs
        yu = yu.reshape(B, Zp, inp_H, inp_W, pZ, pH, pW, upper_channels)
        yu = yu.transpose(0, 1, 4, 2, 5, 3, 6, 7).reshape(
            B, Zp * pZ, inp_H * pH, inp_W * pW, upper_channels)
        ys = ys.reshape(B, inp_H, inp_W, pH, pW, surface_channels)
        ys = ys.transpose(0, 1, 3, 2, 4, 5).reshape(
            B, inp_H * pH, inp_W * pW, surface_channels)
        cz, ch, cw = crop_pad_3d(img_shape, patch_size)
        ch2, cw2 = crop_pad_2d(img_shape[1:], patch_size[1:])
        return yu[:, cz, ch, cw, :], ys[:, ch2, cw2, :][:, None]

    ref_u, ref_s = reference_forward(x)

    # f32-streaming path matches the reference tightly
    fwd_f32 = jax.jit(partial(patch_recovery_forward,
                              img_shape=img_shape, inp_shape=inp_shape,
                              patch_size=patch_size,
                              compute_dtype=jnp.float32))
    u32, s32 = fwd_f32(x, w_up, b_up, w_sf, b_sf)
    jax.block_until_ready((u32, s32))
    assert jnp.allclose(u32, ref_u, atol=1e-4, rtol=1e-4)
    assert jnp.allclose(s32, ref_s, atol=1e-4, rtol=1e-4)

    # bf16-streaming fast path: same math modulo bf16 rounding
    assert jnp.allclose(out_upper, ref_u, atol=2e-2, rtol=2e-2)
    assert jnp.allclose(out_surface, ref_s, atol=2e-2, rtol=2e-2)

    print("KERNEL_OK")
</pallas_src>

<mosaic_0001>
module attributes {stable_mosaic.version = 11 : i64} {
  func.func @matmul_bias_kernel(%arg0: i32, %arg1: memref<96x32xbf16, #tpu.memory_space<vmem>>, %arg2: memref<32x256xbf16, #tpu.memory_space<vmem>>, %arg3: memref<1x256xf32, #tpu.memory_space<vmem>>, %arg4: memref<96x256xbf16, #tpu.memory_space<vmem>>) attributes {dimension_semantics = [#tpu.dimension_semantics<parallel>], iteration_bounds = array<i64: 1>, scalar_prefetch = 0 : i64, scratch_operands = 0 : i64, tpu.core_type = #tpu.core_type<tc>, window_params = [{transform_indices = @transform_0, window_bounds = array<i64: 96, 32>}, {pipeline_mode = #tpu.pipeline_mode<synchronous>, transform_indices = @transform_1, window_bounds = array<i64: 32, 256>}, {pipeline_mode = #tpu.pipeline_mode<synchronous>, transform_indices = @transform_2, window_bounds = array<i64: 1, 256>}, {transform_indices = @transform_3, window_bounds = array<i64: 96, 256>}]} {
    %c0 = arith.constant 0 : index
    %c0_0 = arith.constant 0 : index
    %0 = vector.load %arg1[%c0, %c0_0] : memref<96x32xbf16, #tpu.memory_space<vmem>>, vector<96x32xbf16>
    %c0_1 = arith.constant 0 : index
    %c0_2 = arith.constant 0 : index
    %1 = vector.load %arg2[%c0_1, %c0_2] : memref<32x256xbf16, #tpu.memory_space<vmem>>, vector<32x256xbf16>
    %cst = arith.constant dense<0.000000e+00> : vector<96x256xf32>
    %2 = tpu.matmul %0, %1, %cst {dimension_numbers = #tpu.dot_dimension_numbers<[1], [0], [0], [1], [0, 0, 1, 1], [], []>} : vector<96x32xbf16>, vector<32x256xbf16>, vector<96x256xf32> -> vector<96x256xf32>
    %c0_3 = arith.constant 0 : index
    %c0_4 = arith.constant 0 : index
    %3 = vector.load %arg3[%c0_3, %c0_4] : memref<1x256xf32, #tpu.memory_space<vmem>>, vector<1x256xf32>
    %4 = vector.broadcast %3 : vector<1x256xf32> to vector<96x256xf32>
    %5 = arith.addf %2, %4 : vector<96x256xf32>
    %6 = arith.truncf %5 : vector<96x256xf32> to vector<96x256xbf16>
    %c0_5 = arith.constant 0 : index
    %c0_6 = arith.constant 0 : index
    %7 = vector.load %arg4[%c0_5, %c0_6] : memref<96x256xbf16, #tpu.memory_space<vmem>>, vector<96x256xbf16>
    tpu.vector_store %arg4[%c0_5, %c0_6], %6 {strides = array<i32>} : memref<96x256xbf16, #tpu.memory_space<vmem>>, vector<96x256xbf16>,
    return
  }
  func.func @transform_0(%arg0: i32) -> (i32, i32) {
    %c0_i32 = arith.constant 0 : i32
    %c0_i32_0 = arith.constant 0 : i32
    return %arg0, %c0_i32 : i32, i32
  }
  func.func @transform_1(%arg0: i32) -> (i32, i32) {
    %c0_i32 = arith.constant 0 : i32
    %c0_i32_0 = arith.constant 0 : i32
    %c0_i32_1 = arith.constant 0 : i32
    return %c0_i32, %c0_i32_0 : i32, i32
  }
  func.func @transform_2(%arg0: i32) -> (i32, i32) {
    %c0_i32 = arith.constant 0 : i32
    %c0_i32_0 = arith.constant 0 : i32
    %c0_i32_1 = arith.constant 0 : i32
    return %c0_i32, %c0_i32_0 : i32, i32
  }
  func.func @transform_3(%arg0: i32) -> (i32, i32) {
    %c0_i32 = arith.constant 0 : i32
    %c0_i32_0 = arith.constant 0 : i32
    return %arg0, %c0_i32 : i32, i32
  }
}

module attributes {stable_mosaic.version = 11 : i64} {
  func.func @matmul_bias_kernel(%arg0: i32, %arg1: memref<32x32xbf16, #tpu.memory_space<vmem>>, %arg2: memref<32x128xbf16, #tpu.memory_space<vmem>>, %arg3: memref<1x128xf32, #tpu.memory_space<vmem>>, %arg4: memref<32x128xbf16, #tpu.memory_space<vmem>>) attributes {dimension_semantics = [#tpu.dimension_semantics<parallel>], iteration_bounds = array<i64: 1>, scalar_prefetch = 0 : i64, scratch_operands = 0 : i64, tpu.core_type = #tpu.core_type<tc>, window_params = [{transform_indices = @transform_0, window_bounds = array<i64: 32, 32>}, {pipeline_mode = #tpu.pipeline_mode<synchronous>, transform_indices = @transform_1, window_bounds = array<i64: 32, 128>}, {pipeline_mode = #tpu.pipeline_mode<synchronous>, transform_indices = @transform_2, window_bounds = array<i64: 1, 128>}, {transform_indices = @transform_3, window_bounds = array<i64: 32, 128>}]} {
    %c0 = arith.constant 0 : index
    %c0_0 = arith.constant 0 : index
    %0 = vector.load %arg1[%c0, %c0_0] : memref<32x32xbf16, #tpu.memory_space<vmem>>, vector<32x32xbf16>
    %c0_1 = arith.constant 0 : index
    %c0_2 = arith.constant 0 : index
    %1 = vector.load %arg2[%c0_1, %c0_2] : memref<32x128xbf16, #tpu.memory_space<vmem>>, vector<32x128xbf16>
    %cst = arith.constant dense<0.000000e+00> : vector<32x128xf32>
    %2 = tpu.matmul %0, %1, %cst {dimension_numbers = #tpu.dot_dimension_numbers<[1], [0], [0], [1], [0, 0, 1, 1], [], []>} : vector<32x32xbf16>, vector<32x128xbf16>, vector<32x128xf32> -> vector<32x128xf32>
    %c0_3 = arith.constant 0 : index
    %c0_4 = arith.constant 0 : index
    %3 = vector.load %arg3[%c0_3, %c0_4] : memref<1x128xf32, #tpu.memory_space<vmem>>, vector<1x128xf32>
    %4 = vector.broadcast %3 : vector<1x128xf32> to vector<32x128xf32>
    %5 = arith.addf %2, %4 : vector<32x128xf32>
    %6 = arith.truncf %5 : vector<32x128xf32> to vector<32x128xbf16>
    %c0_5 = arith.constant 0 : index
    %c0_6 = arith.constant 0 : index
    %7 = vector.load %arg4[%c0_5, %c0_6] : memref<32x128xbf16, #tpu.memory_space<vmem>>, vector<32x128xbf16>
    tpu.vector_store %arg4[%c0_5, %c0_6], %6 {strides = array<i32>} : memref<32x128xbf16, #tpu.memory_space<vmem>>, vector<32x128xbf16>,
    return
  }
  func.func @transform_0(%arg0: i32) -> (i32, i32) {
    %c0_i32 = arith.constant 0 : i32
    %c0_i32_0 = arith.constant 0 : i32
    return %arg0, %c0_i32 : i32, i32
  }
  func.func @transform_1(%arg0: i32) -> (i32, i32) {
    %c0_i32 = arith.constant 0 : i32
    %c0_i32_0 = arith.constant 0 : i32
    %c0_i32_1 = arith.constant 0 : i32
    return %c0_i32, %c0_i32_0 : i32, i32
  }
  func.func @transform_2(%arg0: i32) -> (i32, i32) {
    %c0_i32 = arith.constant 0 : i32
    %c0_i32_0 = arith.constant 0 : i32
    %c0_i32_1 = arith.constant 0 : i32
    return %c0_i32, %c0_i32_0 : i32, i32
  }
  func.func @transform_3(%arg0: i32) -> (i32, i32) {
    %c0_i32 = arith.constant 0 : i32
    %c0_i32_0 = arith.constant 0 : i32
    return %arg0, %c0_i32 : i32, i32
  }
}

</mosaic_0001>

<bundles_post_ra>
// kernel: tile.13
= control target key start
LH: loop header
LB: loop body
LE: loop exit
PB: predicated region body
PF: predicated region fallthrough
CT: control target
= control target key end

     0   :  { %s40_s0 = inlined_call_operand.vmem [shape: f32[5], index: 0, kind: input, shape index: {}]   ;;  %s41_s1 = inlined_call_operand.vmem [shape: f32[32,5], index: 1, kind: output, shape index: {}]  }
   0x1   :  { %v4_v0 = vld [vmem:[%s40_s0] ss:$0 sm:$0xff] }
   0x2   :  { %5 = vst [vmem:[%s41_s1] sm:$0xff] %v4_v0  ;;  %12 = vst [vmem:[%s41_s1 + $0x8] sm:$0xff] %v4_v0 }
   0x3   :  { %13 = vst [vmem:[%s41_s1 + $0x10] sm:$0xff] %v4_v0  ;;  %14 = vst [vmem:[%s41_s1 + $0x18] sm:$0xff] %v4_v0 }

// kernel: tile.14
= control target key start
LH: loop header
LB: loop body
LE: loop exit
PB: predicated region body
PF: predicated region fallthrough
CT: control target
= control target key end

     0   :  { %vm9_vm0 = vcmask 23552   ;;  %s273_s12 = smov 125   ;;  %s274_s13 = smov 115   ;;  %vm3_vm1 = vcmask 39936   ;;  %vm13_vm2 = vcmask 15360   ;;  %vm16_vm3 = vcmask 1048552   ;;  %s416_s0 = inlined_call_operand.vmem [shape: f32[32,5], index: 0, kind: input, shape index: {}]   ;;  %s417_s1 = inlined_call_operand.vmem [shape: f32[160], index: 1, kind: output, shape index: {}]  }
   0x1   :  { %v210_v0 = vld [vmem:[%s416_s0 + $0x19] sm:$0x1]   ;;  %v213_v3 = vld [vmem:[%s416_s0 + $0x17] sm:$0x1]   ;;  %v212_v4 = vld [vmem:[%s416_s0 + $0x18] sm:$0x1]  }
   0x2   :  { %v211_v1 = vld [vmem:[%s416_s0 + $0x19] sm:$0x1]   ;;  %26 = vrot.lane.b32.xlu1 %v213_v3, %s274_s13  ;;  %v214_v5 = vld [vmem:[%s416_s0 + $0x16] sm:$0x1]   ;;  %s275_s18 = smov 120   ;;  %s276_s19 = smov 110  }
   0x3   :  { %v10_v2 = vsel %vm9_vm0, %v211_v1, %v210_v0  ;;  %v215_v6 = vld [vmem:[%s416_s0 + $0x15] sm:$0x1]   ;;  %v216_v7 = vld [vmem:[%s416_s0 + $0x14] sm:$0x1]   ;;  %s277_s24 = smov 105   ;;  %s278_s25 = smov 100  }
   0x4   :  { %11 = vrot.lane.b32.xlu0 %v10_v2, %s273_s12  ;;  %v217_v8 = vld [vmem:[%s416_s0 + $0x13] sm:$0x1]   ;;  %v218_v9 = vld [vmem:[%s416_s0 + $0x12] sm:$0x1]   ;;  %s279_s30 = smov 95   ;;  %s280_s2 = smov 90  }
   0x5   :  { %v219_v10 = vld [vmem:[%s416_s0 + $0x11] sm:$0x1]   ;;  %v220_v11 = vld [vmem:[%s416_s0 + $0x10] sm:$0x1]   ;;  %v2_v12 = vld [vmem:[%s416_s0] sm:$0x1]  }
   0x6   :  { %32 = vrot.lane.b32.xlu1 %v214_v5, %s276_s19  ;;  %4 = vst.msk [vmem:[#allocation0] sm:$0x1] %vm3_vm1, %v2_v12   ;;  %s281_s9 = smov 85   ;;  %s282_s10 = smov 80   ;;  %v221_v13 = vld [vmem:[%s416_s0 + $0xf] sm:$0x1]  }
   0x7   :  { %v222_v14 = vld [vmem:[%s416_s0 + $0xe] sm:$0x1]   ;;  %s283_s15 = smov 75   ;;  %s284_s16 = smov 70   ;;  %v223_v15 = vld [vmem:[%s416_s0 + $0xd] sm:$0x1]  }
   0x8   :  { %20 = vrot.lane.b32.xlu0 %v212_v4, %s275_s18  ;;  %v224_v16 = vld [vmem:[%s416_s0 + $0xc] sm:$0x1]   ;;  %s285_s21 = smov 65   ;;  %s286_s22 = smov 60   ;;  %v225_v17 = vld [vmem:[%s416_s0 + $0xb] sm:$0x1]  }
   0x9   :  { %v226_v18 = vld [vmem:[%s416_s0 + $0xa] sm:$0x1]   ;;  %s287_s27 = smov 55   ;;  %s288_s28 = smov 50   ;;  %v227_v19 = vld [vmem:[%s416_s0 + $0x9] sm:$0x1]  }
   0xa   :  { %44 = vrot.lane.b32.xlu1 %v216_v7, %s278_s25  ;;  %v228_v20 = vld [vmem:[%s416_s0 + $0x8] sm:$0x1]   ;;  %s289_s4 = smov 45   ;;  %s290_s5 = smov 40   ;;  %v229_v21 = vld [vmem:[%s416_s0 + $0x7] sm:$0x1]  }
   0xb   :  { %v230_v22 = vld [vmem:[%s416_s0 + $0x6] sm:$0x1]   ;;  %s292_s11 = smov 30   ;;  %v231_v23 = vld [vmem:[%s416_s0 + $0x1f] sm:$0x1]   ;;  %s294_s17 = smov 25  }
   0xc   :  { %38 = vrot.lane.b32.xlu0 %v215_v6, %s277_s24  ;;  %v232_v24 = vld [vmem:[%s416_s0 + $0x5] sm:$0x1]   ;;  %v233_v25 = vld [vmem:[%s416_s0 + $0x1e] sm:$0x1]   ;;  %v234_v26 = vld [vmem:[%s416_s0 + $0x4] sm:$0x1]  }
   0xd   :  { %s296_s23 = smov 20   ;;  %v235_v27 = vld [vmem:[%s416_s0 + $0x1d] sm:$0x1]   ;;  %v236_v28 = vld [vmem:[%s416_s0 + $0x3] sm:$0x1]   ;;  %s298_s29 = smov 15  }
   0xe   :  { %56 = vrot.lane.b32.xlu1 %v218_v9, %s280_s2  ;;  %v237_v29 = vld [vmem:[%s416_s0 + $0x1c] sm:$0x1]   ;;  %v238_v30 = vld [vmem:[%s416_s0 + $0x2] sm:$0x1]   ;;  %s300_s6 = smov 10   ;;  %s302_s12 = smov 5  }
   0xf   :  { %v239_v31 = vld [vmem:[%s416_s0 + $0x1b] sm:$0x1]   ;;  %v240_v32 = vld [vmem:[%s416_s0 + $0x1] sm:$0x1]   ;;  %v241_v33 = vld [vmem:[%s416_s0 + $0x1a] sm:$0x1]  }
  0x10   :  { %50 = vrot.lane.b32.xlu0 %v217_v8, %s279_s30  ;;  %s303_s0 = smov 2   ;;  %vm22_vm4 = vcmask 1023936   ;;  %vm28_vm5 = vcmask 982936   ;;  %vm34_vm6 = vcmask 941936   ;;  %vm40_vm7 = vcmask 900936  }
  0x11   :  { %vm46_vm8 = vcmask 859936   ;;  %vm52_vm9 = vcmask 818936   ;;  %vm58_vm10 = vcmask 777936   ;;  %vm64_vm11 = vcmask 736936  }
  0x12   :  { %68 = vrot.lane.b32.xlu1 %v220_v11, %s282_s10  ;;  %s291_s10 = smov 35   ;;  %vm70_vm12 = vcmask 695936   ;;  %vm76_vm13 = vcmask 654936   ;;  %vm82_vm14 = vcmask 613936   ;;  %vm88_vm15 = vcmask 572936  }
  0x13   :  { %vm94_vm0 = vcmask 531936   ;;  %vm100_vm1 = vcmask 490936  }
  0x14   :  { %62 = vrot.lane.b32.xlu0 %v219_v10, %s281_s9 }
  0x16   :  { %80 = vrot.lane.b32.xlu1 %v222_v14, %s284_s16  ;;  %s293_s16 = smov 27  }
  0x18   :  { %74 = vrot.lane.b32.xlu0 %v221_v13, %s283_s15 }
  0x1a   :  { %92 = vrot.lane.b32.xlu1 %v224_v16, %s286_s22  ;;  %s295_s22 = smov 22  }
  0x1c   :  { %86 = vrot.lane.b32.xlu0 %v223_v15, %s285_s21 }
  0x1e   :  { %104 = vrot.lane.b32.xlu1 %v226_v18, %s288_s28  ;;  %s297_s28 = smov 17  }
  0x20   :  { %98 = vrot.lane.b32.xlu0 %v225_v17, %s287_s27 }
  0x22   :  { %116 = vrot.lane.b32.xlu1 %v228_v20, %s290_s5  ;;  %s299_s5 = smov 12  }
  0x24   :  { %110 = vrot.lane.b32.xlu0 %v227_v19, %s289_s4 }
  0x26   :  { %128 = vrot.lane.b32.xlu1 %v230_v22, %s292_s11  ;;  %s301_s11 = smov 7  }
  0x28   :  { %122 = vrot.lane.b32.xlu0 %v229_v21, %s291_s10 }
  0x2a   :  { %141 = vrot.lane.b32.xlu1 %v232_v24, %s294_s17 }
  0x2c   :  { %134 = vrot.lane.b32.xlu0 %v231_v23, %s293_s16 }
  0x2e   :  { %154 = vrot.lane.b32.xlu1 %v234_v26, %s296_s23 }
  0x30   :  { %147 = vrot.lane.b32.xlu0 %v233_v25, %s295_s22 }
  0x32   :  { %167 = vrot.lane.b32.xlu1 %v236_v28, %s298_s29 }
  0x34   :  { %160 = vrot.lane.b32.xlu0 %v235_v27, %s297_s28 }
  0x36   :  { %180 = vrot.lane.b32.xlu1 %v238_v30, %s300_s6 }
  0x38   :  { %173 = vrot.lane.b32.xlu0 %v237_v29, %s299_s5 }
  0x3a   :  { %193 = vrot.lane.b32.xlu1 %v240_v32, %s302_s12 }
  0x3c   :  { %186 = vrot.lane.b32.xlu0 %v239_v31, %s301_s11 }
  0x40   :  { %199 = vrot.lane.b32.xlu0 %v241_v33, %s303_s0 }
  0x74   :  { %v27_v35 = vpop.permute.xlu1 %26  }
  0x76   :  { %v12_v34 = vpop.permute.xlu0 %11  }
  0x77   :  { %15 = vst.msk [vmem:[#allocation0 + $0x1] sm:$0x1] %vm13_vm2, %v12_v34   ;;  %vm106_vm2 = vcmask 449936  }
  0x78   :  { %17 = vst.msk [vmem:[#allocation0] sm:$0x1] %vm16_vm3, %v12_v34   ;;  %v33_v37 = vpop.permute.xlu1 %32   ;;  %vm112_vm3 = vcmask 408936  }
  0x7a   :  { %v21_v36 = vpop.permute.xlu0 %20  }
  0x7b   :  { %23 = vst.msk [vmem:[#allocation0] sm:$0x1] %vm22_vm4, %v21_v36   ;;  %vm118_vm4 = vcmask 367936  }
  0x7c   :  { %29 = vst.msk [vmem:[#allocation0] sm:$0x1] %vm28_vm5, %v27_v35   ;;  %v45_v39 = vpop.permute.xlu1 %44   ;;  %vm124_vm5 = vcmask 326936  }
  0x7d   :  { %35 = vst.msk [vmem:[#allocation0] sm:$0x1] %vm34_vm6, %v33_v37   ;;  %vm130_vm6 = vcmask 285936  }
  0x7e   :  { %v39_v38 = vpop.permute.xlu0 %38  }
  0x7f   :  { %41 = vst.msk [vmem:[#allocation0] sm:$0x1] %vm40_vm7, %v39_v38   ;;  %vm136_vm7 = vcmask 261336  }
  0x80   :  { %47 = vst.msk [vmem:[#allocation0] sm:$0x1] %vm46_vm8, %v45_v39   ;;  %v57_v41 = vpop.permute.xlu1 %56   ;;  %vm143_vm8 = vcmask 244936  }
  0x82   :  { %v51_v40 = vpop.permute.xlu0 %50  }
  0x83   :  { %53 = vst.msk [vmem:[#allocation0] sm:$0x1] %vm52_vm9, %v51_v40   ;;  %vm149_vm9 = vcmask 220336  }
  0x84   :  { %59 = vst.msk [vmem:[#allocation0] sm:$0x1] %vm58_vm10, %v57_v41   ;;  %v69_v43 = vpop.permute.xlu1 %68   ;;  %vm156_vm10 = vcmask 203936  }
  0x86   :  { %v63_v42 = vpop.permute.xlu0 %62  }
  0x87   :  { %65 = vst.msk [vmem:[#allocation0] sm:$0x1] %vm64_vm11, %v63_v42   ;;  %vm162_vm11 = vcmask 179336  }
  0x88   :  { %71 = vst.msk [vmem:[#allocation0] sm:$0x1] %vm70_vm12, %v69_v43   ;;  %v81_v45 = vpop.permute.xlu1 %80   ;;  %vm169_vm12 = vcmask 162936  }
  0x8a   :  { %v75_v44 = vpop.permute.xlu0 %74  }
  0x8b   :  { %77 = vst.msk [vmem:[#allocation0] sm:$0x1] %vm76_vm13, %v75_v44   ;;  %vm175_vm13 = vcmask 138336  }
  0x8c   :  { %83 = vst.msk [vmem:[#allocation0] sm:$0x1] %vm82_vm14, %v81_v45   ;;  %v93_v47 = vpop.permute.xlu1 %92   ;;  %vm182_vm14 = vcmask 121936  }
  0x8e   :  { %v87_v46 = vpop.permute.xlu0 %86  }
  0x8f   :  { %89 = vst.msk [vmem:[#allocation0] sm:$0x1] %vm88_vm15, %v87_v46   ;;  %vm188_vm15 = vcmask 97336  }
  0x90   :  { %95 = vst.msk [vmem:[#allocation0] sm:$0x1] %vm94_vm0, %v93_v47   ;;  %v105_v49 = vpop.permute.xlu1 %104   ;;  %vm195_vm0 = vcmask 80936  }
  0x92   :  { %v99_v48 = vpop.permute.xlu0 %98  }
  0x93   :  { %101 = vst.msk [vmem:[#allocation0] sm:$0x1] %vm100_vm1, %v99_v48   ;;  %vm201_vm1 = vcmask 56336  }
  0x94   :  { %107 = vst.msk [vmem:[#allocation0] sm:$0x1] %vm106_vm2, %v105_v49   ;;  %v117_v51 = vpop.permute.xlu1 %116  }
  0x96   :  { %v111_v50 = vpop.permute.xlu0 %110  }
  0x97   :  { %113 = vst.msk [vmem:[#allocation0] sm:$0x1] %vm112_vm3, %v111_v50  }
  0x98   :  { %119 = vst.msk [vmem:[#allocation0] sm:$0x1] %vm118_vm4, %v117_v51   ;;  %v129_v53 = vpop.permute.xlu1 %128  }
  0x9a   :  { %v123_v52 = vpop.permute.xlu0 %122  }
  0x9b   :  { %125 = vst.msk [vmem:[#allocation0] sm:$0x1] %vm124_vm5, %v123_v52  }
  0x9c   :  { %131 = vst.msk [vmem:[#allocation0] sm:$0x1] %vm130_vm6, %v129_v53   ;;  %v142_v55 = vpop.permute.xlu1 %141  }
  0x9d   :  { %144 = vst.msk [vmem:[#allocation0] sm:$0x1] %vm143_vm8, %v142_v55  }
  0x9e   :  { %v135_v54 = vpop.permute.xlu0 %134  }
  0x9f   :  { %138 = vst.msk [vmem:[#allocation0 + $0x1] sm:$0x1] %vm136_vm7, %v135_v54  }
  0xa0   :  { %v155_v57 = vpop.permute.xlu1 %154  }
  0xa1   :  { %157 = vst.msk [vmem:[#allocation0] sm:$0x1] %vm156_vm10, %v155_v57  }
  0xa2   :  { %v148_v56 = vpop.permute.xlu0 %147  }
  0xa3   :  { %151 = vst.msk [vmem:[#allocation0 + $0x1] sm:$0x1] %vm149_vm9, %v148_v56  }
  0xa4   :  { %v168_v59 = vpop.permute.xlu1 %167  }
  0xa5   :  { %170 = vst.msk [vmem:[#allocation0] sm:$0x1] %vm169_vm12, %v168_v59  }
  0xa6   :  { %v161_v58 = vpop.permute.xlu0 %160  }
  0xa7   :  { %164 = vst.msk [vmem:[#allocation0 + $0x1] sm:$0x1] %vm162_vm11, %v161_v58  }
  0xa8   :  { %v181_v61 = vpop.permute.xlu1 %180  }
  0xa9   :  { %183 = vst.msk [vmem:[#allocation0] sm:$0x1] %vm182_vm14, %v181_v61  }
  0xaa   :  { %v174_v60 = vpop.permute.xlu0 %173  }
  0xab   :  { %177 = vst.msk [vmem:[#allocation0 + $0x1] sm:$0x1] %vm175_vm13, %v174_v60  }
  0xac   :  { %v194_v63 = vpop.permute.xlu1 %193  }
  0xad   :  { %196 = vst.msk [vmem:[#allocation0] sm:$0x1] %vm195_vm0, %v194_v63  }
  0xae   :  { %v187_v62 = vpop.permute.xlu0 %186  }
  0xaf   :  { %190 = vst.msk [vmem:[#allocation0 + $0x1] sm:$0x1] %vm188_vm15, %v187_v62  }
  0xb2   :  { %v200_v0 = vpop.permute.xlu0 %199  }
  0xb3   :  { %203 = vst.msk [vmem:[#allocation0 + $0x1] sm:$0x1] %vm201_vm1, %v200_v0  }
  0xba   :  { %v207_v1 = vld [vmem:[#allocation0] sm:$0x3] }
  0xbb   :  { %209 = vst [vmem:[%s417_s1] sm:$0x3] %v207_v1 }

// kernel: patch_recovery_forward.2
= control target key start
LH: loop header
LB: loop body
LE: loop exit
PB: predicated region body
PF: predicated region fallthrough
CT: control target
= control target key end

     0   :  { %v350_v1 = vmov 0   ;;  %vm93_vm0 = vcmask 261120   ;;  %v33_v11 = vlaneseq  ;;  %s454_s1 = inlined_call_operand.vmem [shape: bf16[32,256], index: 1, kind: input, shape index: {}]   ;;  %s455_s0 = inlined_call_operand.vmem [shape: bf16[96,32], index: 0, kind: input, shape index: {}]   ;;  %s456_s2 = inlined_call_operand.vmem [shape: f32[1,256], index: 2, kind: input, shape index: {}]   ;;  %s457_s3 = inlined_call_operand.vmem [shape: bf16[96,256], index: 3, kind: output, shape index: {}]  }
   0x1   :  { %v338_v0 = vld [vmem:[%s454_s1 + $0x4] ss:$8 sps:$4 sm:$0xff]   ;;  %144 = vmatprep.mubr.bf16.mxu0 %v350_v1  ;;  %174 = vmatprep.mubr.bf16.mxu1 %v350_v1  ;;  %v340_v2 = vld [vmem:[%s454_s1] ss:$8 sps:$4 sm:$0xff]   ;;  %v341_v3 = vld [vmem:[%s454_s1 + $0x14] ss:$8 sps:$4 sm:$0xff]  }
   0x2   :  { %112 = vmatprep.subr.bf16.mxu0 %v338_v0  ;;  %333 = vmatprep.subr.bf16.mxu1 %v338_v0  ;;  %v343_v4 = vld [vmem:[%s454_s1 + $0x10] ss:$8 sps:$4 sm:$0xff]   ;;  %v344_v5 = vld [vmem:[%s455_s0] sm:$0xff]   ;;  %v346_v7 = vld [vmem:[%s455_s0 + $0x8] sm:$0xff]   ;;  %v34_v12 = vshrl.u32 %v33_v11, 7 }
   0x3   :  { %113 = vmatpush1.bf16.msra.mxu0 %v340_v2  ;;  %335 = vmatpush1.bf16.msra.mxu1 %v340_v2  ;;  %v345_v6 = vld [vmem:[%s455_s0 + $0x18] sm:$0xff]   ;;  %v347_v8 = vld [vmem:[%s455_s0 + $0x20] sm:$0xff]   ;;  %v348_v9 = vld [vmem:[%s455_s0 + $0x10] sm:$0xff]  }
   0x4   :  { %114 = vmatprep.subr.bf16.mxu0 %v341_v3  ;;  %334 = vmatprep.subr.bf16.mxu1 %v341_v3  ;;  %v349_v10 = vld [vmem:[%s455_s0 + $0x28] sm:$0xff]   ;;  %v35_v13 = vsub.s32 0, %v34_v12  ;;  %v31_v14 = vld [vmem:[%s456_s2] sm:$0x3]  ;;  %v39_v15 = vsub.s32 1, %v34_v12 }
   0x6   :  { %v36_v16 = vrot.slane %v31_v14, %v35_v13  ;;  %v404_v17 = vrot.slane %v31_v14, %v39_v15 }
   0x7   :  { %115 = vmatpush1.bf16.msra.mxu0 %v343_v4  ;;  %336 = vmatpush1.bf16.msra.mxu1 %v343_v4 }
   0xa   :  { %303 = vmatmul.mubr.msk.bf16.vlgmr.msra.gmra.mrb[0].mxu0 %vm93_vm0, %v344_v5  ;;  %306 = vmatmul.mubr.msk.bf16.vlgmr.msra.gmra.mrb[0].mxu1 %vm93_vm0, %v345_v6 }
   0xb   :  { %154 = vmatprep.mubr.bf16.mxu0 %v350_v1  ;;  %184 = vmatprep.mubr.bf16.mxu1 %v350_v1 }
  0x12   :  { %304 = vmatmul.mubr.msk.bf16.gmra.mrb[4].mxu0 %vm93_vm0, %v346_v7  ;;  %307 = vmatmul.mubr.msk.bf16.gmra.mrb[4].mxu1 %vm93_vm0, %v347_v8 }
  0x13   :  { %164 = vmatprep.mubr.bf16.mxu0 %v350_v1  ;;  %194 = vmatprep.mubr.bf16.mxu1 %v350_v1 }
  0x1a   :  { %305 = vmatmul.mubr.msk.bf16.gmra.mrb[8].mxu0 %vm93_vm0, %v348_v9  ;;  %308 = vmatmul.mubr.msk.bf16.gmra.mrb[8].mxu1 %vm93_vm0, %v349_v10 }
  0xdd   :  { %v146_v18 = vpop.f32.mrb[0].mxu0  ;;  %v176_v19 = vpop.f32.mrb[0].mxu1 }
  0xde   :  { %v147_v20 = vadd.f32 %v146_v18, %v36_v16  ;;  %v177_v21 = vadd.f32 %v176_v19, %v36_v16  ;;  %v148_v22 = vpop.f32.mrb[1].mxu0  ;;  %v178_v23 = vpop.f32.mrb[1].mxu1 }
  0xdf   :  { %v149_v24 = vadd.f32 %v148_v22, %v404_v17  ;;  %v179_v25 = vadd.f32 %v178_v23, %v404_v17  ;;  %v150_v26 = vpop.f32.mrb[2].mxu0  ;;  %v180_v27 = vpop.f32.mrb[2].mxu1 }
  0xe0   :  { %v151_v28 = vadd.f32 %v150_v26, %v36_v16  ;;  %v181_v29 = vadd.f32 %v180_v27, %v36_v16  ;;  %v152_v30 = vpop.f32.mrb[3].mxu0  ;;  %v182_v31 = vpop.f32.mrb[3].mxu1 }
  0xe1   :  { %v321_v32 = vpack.c.bf16 %v149_v24, %v147_v20  ;;  %v327_v33 = vpack.c.bf16 %v179_v25, %v177_v21  ;;  %v153_v34 = vadd.f32 %v152_v30, %v404_v17  ;;  %v183_v35 = vadd.f32 %v182_v31, %v404_v17 }
  0xe3   :  { %277 = vst [vmem:[%s457_s3] sm:$0xff] %v321_v32  ;;  %283 = vst [vmem:[%s457_s3 + $0x30] sm:$0xff] %v327_v33  ;;  %v322_v36 = vpack.c.bf16 %v153_v34, %v151_v28  ;;  %v328_v37 = vpack.c.bf16 %v183_v35, %v181_v29 }
  0xe5   :  { %278 = vst [vmem:[%s457_s3 + $0x8] sm:$0xff] %v322_v36  ;;  %284 = vst [vmem:[%s457_s3 + $0x38] sm:$0xff] %v328_v37  ;;  %v156_v38 = vpop.f32.mrb[4].mxu0  ;;  %v186_v39 = vpop.f32.mrb[4].mxu1 }
  0xe6   :  { %v157_v40 = vadd.f32 %v156_v38, %v36_v16  ;;  %v187_v41 = vadd.f32 %v186_v39, %v36_v16  ;;  %v158_v42 = vpop.f32.mrb[5].mxu0  ;;  %v188_v43 = vpop.f32.mrb[5].mxu1 }
  0xe7   :  { %v159_v44 = vadd.f32 %v158_v42, %v404_v17  ;;  %v189_v45 = vadd.f32 %v188_v43, %v404_v17  ;;  %v160_v46 = vpop.f32.mrb[6].mxu0  ;;  %v190_v47 = vpop.f32.mrb[6].mxu1 }
  0xe8   :  { %v161_v48 = vadd.f32 %v160_v46, %v36_v16  ;;  %v191_v49 = vadd.f32 %v190_v47, %v36_v16  ;;  %v162_v50 = vpop.f32.mrb[7].mxu0  ;;  %v192_v51 = vpop.f32.mrb[7].mxu1 }
  0xe9   :  { %v323_v52 = vpack.c.bf16 %v159_v44, %v157_v40  ;;  %v329_v53 = vpack.c.bf16 %v189_v45, %v187_v41  ;;  %v163_v54 = vadd.f32 %v162_v50, %v404_v17  ;;  %v193_v55 = vadd.f32 %v192_v51, %v404_v17 }
  0xeb   :  { %279 = vst [vmem:[%s457_s3 + $0x10] sm:$0xff] %v323_v52  ;;  %285 = vst [vmem:[%s457_s3 + $0x40] sm:$0xff] %v329_v53  ;;  %v324_v56 = vpack.c.bf16 %v163_v54, %v161_v48  ;;  %v330_v57 = vpack.c.bf16 %v193_v55, %v191_v49 }
  0xed   :  { %280 = vst [vmem:[%s457_s3 + $0x18] sm:$0xff] %v324_v56  ;;  %286 = vst [vmem:[%s457_s3 + $0x48] sm:$0xff] %v330_v57  ;;  %v166_v58 = vpop.f32.mrb[8].mxu0  ;;  %v196_v59 = vpop.f32.mrb[8].mxu1 }
  0xee   :  { %v167_v60 = vadd.f32 %v166_v58, %v36_v16  ;;  %v197_v61 = vadd.f32 %v196_v59, %v36_v16  ;;  %v168_v62 = vpop.f32.mrb[9].mxu0  ;;  %v198_v63 = vpop.f32.mrb[9].mxu1 }
  0xef   :  { %v169_v0 = vadd.f32 %v168_v62, %v404_v17  ;;  %v199_v1 = vadd.f32 %v198_v63, %v404_v17  ;;  %v170_v2 = vpop.f32.mrb[10].mxu0  ;;  %v200_v3 = vpop.f32.mrb[10].mxu1 }
  0xf0   :  { %v171_v4 = vadd.f32 %v170_v2, %v36_v16  ;;  %v201_v5 = vadd.f32 %v200_v3, %v36_v16  ;;  %v172_v6 = vpop.f32.mrb[11].mxu0  ;;  %v202_v7 = vpop.f32.mrb[11].mxu1 }
  0xf1   :  { %v325_v8 = vpack.c.bf16 %v169_v0, %v167_v60  ;;  %v331_v9 = vpack.c.bf16 %v199_v1, %v197_v61  ;;  %v173_v10 = vadd.f32 %v172_v6, %v404_v17  ;;  %v203_v11 = vadd.f32 %v202_v7, %v404_v17 }
  0xf3   :  { %281 = vst [vmem:[%s457_s3 + $0x20] sm:$0xff] %v325_v8  ;;  %287 = vst [vmem:[%s457_s3 + $0x50] sm:$0xff] %v331_v9  ;;  %v326_v12 = vpack.c.bf16 %v173_v10, %v171_v4  ;;  %v332_v13 = vpack.c.bf16 %v203_v11, %v201_v5 }
  0xf5   :  { %282 = vst [vmem:[%s457_s3 + $0x28] sm:$0xff] %v326_v12  ;;  %288 = vst [vmem:[%s457_s3 + $0x58] sm:$0xff] %v332_v13 }

// kernel: tile.18
= control target key start
LH: loop header
LB: loop body
LE: loop exit
PB: predicated region body
PF: predicated region fallthrough
CT: control target
= control target key end

     0   :  { %s28_s0 = inlined_call_operand.vmem [shape: f32[4], index: 0, kind: input, shape index: {}]   ;;  %s29_s1 = inlined_call_operand.vmem [shape: f32[16,4], index: 1, kind: output, shape index: {}]  }
   0x1   :  { %v4_v0 = vld [vmem:[%s28_s0] ss:$0 sm:$0xff] }
   0x2   :  { %5 = vst [vmem:[%s29_s1] sm:$0xff] %v4_v0  ;;  %8 = vst [vmem:[%s29_s1 + $0x8] sm:$0xff] %v4_v0 }

// kernel: tile.19
= control target key start
LH: loop header
LB: loop body
LE: loop exit
PB: predicated region body
PF: predicated region fallthrough
CT: control target
= control target key end

     0   :  { %s131_s10 = smov 60   ;;  %s132_s11 = smov 52   ;;  %vm3_vm0 = vcmask 31744   ;;  %vm9_vm1 = vcmask 523744   ;;  %vm15_vm2 = vcmask 490944   ;;  %vm21_vm3 = vcmask 458144   ;;  %s207_s0 = inlined_call_operand.vmem [shape: f32[16,4], index: 0, kind: input, shape index: {}]   ;;  %s208_s1 = inlined_call_operand.vmem [shape: f32[64], index: 1, kind: output, shape index: {}]  }
   0x1   :  { %v101_v0 = vld [vmem:[%s207_s0 + $0xf] sm:$0x1]   ;;  %v103_v1 = vld [vmem:[%s207_s0 + $0xd] sm:$0x1]   ;;  %v102_v2 = vld [vmem:[%s207_s0 + $0xe] sm:$0x1]  }
   0x2   :  { %7 = vrot.lane.b32.xlu0 %v101_v0, %s131_s10  ;;  %19 = vrot.lane.b32.xlu1 %v103_v1, %s132_s11  ;;  %v104_v3 = vld [vmem:[%s207_s0 + $0xc] sm:$0x1]   ;;  %s133_s16 = smov 56   ;;  %s134_s17 = smov 48   ;;  %v105_v4 = vld [vmem:[%s207_s0 + $0xb] sm:$0x1]  }
   0x3   :  { %v106_v5 = vld [vmem:[%s207_s0 + $0xa] sm:$0x1]   ;;  %v2_v6 = vld [vmem:[%s207_s0] sm:$0x1]   ;;  %s135_s24 = smov 44   ;;  %s136_s25 = smov 40  }
   0x4   :  { %4 = vst.msk [vmem:[#allocation0] sm:$0x1] %vm3_vm0, %v2_v6   ;;  %v107_v7 = vld [vmem:[%s207_s0 + $0x9] sm:$0x1]   ;;  %v108_v8 = vld [vmem:[%s207_s0 + $0x8] sm:$0x1]  }
   0x5   :  { %s137_s30 = smov 36   ;;  %s138_s2 = smov 32   ;;  %v109_v9 = vld [vmem:[%s207_s0 + $0x7] sm:$0x1]   ;;  %v110_v10 = vld [vmem:[%s207_s0 + $0x6] sm:$0x1]  }
   0x6   :  { %13 = vrot.lane.b32.xlu0 %v102_v2, %s133_s16  ;;  %25 = vrot.lane.b32.xlu1 %v104_v3, %s134_s17  ;;  %s139_s7 = smov 28   ;;  %s140_s8 = smov 24   ;;  %v111_v11 = vld [vmem:[%s207_s0 + $0x5] sm:$0x1]   ;;  %v112_v12 = vld [vmem:[%s207_s0 + $0x4] sm:$0x1]  }
   0x7   :  { %s141_s13 = smov 20   ;;  %s142_s14 = smov 16   ;;  %v113_v13 = vld [vmem:[%s207_s0 + $0x3] sm:$0x1]   ;;  %v114_v14 = vld [vmem:[%s207_s0 + $0x2] sm:$0x1]  }
   0x8   :  { %s143_s19 = smov 12   ;;  %s144_s20 = smov 8   ;;  %v115_v15 = vld [vmem:[%s207_s0 + $0x1] sm:$0x1]   ;;  %vm27_vm4 = vcmask 425344   ;;  %vm33_vm5 = vcmask 392544  }
   0x9   :  { %s145_s0 = smov 4   ;;  %vm39_vm6 = vcmask 359744   ;;  %vm45_vm7 = vcmask 326944   ;;  %vm51_vm8 = vcmask 294144   ;;  %vm57_vm9 = vcmask 261344  }
   0xa   :  { %31 = vrot.lane.b32.xlu0 %v105_v4, %s135_s24  ;;  %37 = vrot.lane.b32.xlu1 %v106_v5, %s136_s25  ;;  %vm63_vm10 = vcmask 228544   ;;  %vm69_vm11 = vcmask 195744   ;;  %vm75_vm12 = vcmask 162944   ;;  %vm81_vm13 = vcmask 130144  }
   0xb   :  { %vm87_vm14 = vcmask 97344   ;;  %vm93_vm15 = vcmask 64544  }
   0xe   :  { %43 = vrot.lane.b32.xlu0 %v107_v7, %s137_s30  ;;  %49 = vrot.lane.b32.xlu1 %v108_v8, %s138_s2 }
  0x12   :  { %55 = vrot.lane.b32.xlu0 %v109_v9, %s139_s7  ;;  %61 = vrot.lane.b32.xlu1 %v110_v10, %s140_s8 }
  0x16   :  { %67 = vrot.lane.b32.xlu0 %v111_v11, %s141_s13  ;;  %73 = vrot.lane.b32.xlu1 %v112_v12, %s142_s14 }
  0x1a   :  { %79 = vrot.lane.b32.xlu0 %v113_v13, %s143_s19  ;;  %85 = vrot.lane.b32.xlu1 %v114_v14, %s144_s20 }
  0x1e   :  { %91 = vrot.lane.b32.xlu0 %v115_v15, %s145_s0 }
  0x74   :  { %v8_v16 = vpop.permute.xlu0 %7   ;;  %v20_v17 = vpop.permute.xlu1 %19  }
  0x75   :  { %10 = vst.msk [vmem:[#allocation0] sm:$0x1] %vm9_vm1, %v8_v16  }
  0x78   :  { %v14_v18 = vpop.permute.xlu0 %13   ;;  %v26_v19 = vpop.permute.xlu1 %25  }
  0x79   :  { %16 = vst.msk [vmem:[#allocation0] sm:$0x1] %vm15_vm2, %v14_v18  }
  0x7a   :  { %22 = vst.msk [vmem:[#allocation0] sm:$0x1] %vm21_vm3, %v20_v17  }
  0x7b   :  { %28 = vst.msk [vmem:[#allocation0] sm:$0x1] %vm27_vm4, %v26_v19  }
  0x7c   :  { %v32_v20 = vpop.permute.xlu0 %31   ;;  %v38_v21 = vpop.permute.xlu1 %37  }
  0x7d   :  { %34 = vst.msk [vmem:[#allocation0] sm:$0x1] %vm33_vm5, %v32_v20  }
  0x7e   :  { %40 = vst.msk [vmem:[#allocation0] sm:$0x1] %vm39_vm6, %v38_v21  }
  0x80   :  { %v44_v22 = vpop.permute.xlu0 %43   ;;  %v50_v23 = vpop.permute.xlu1 %49  }
  0x81   :  { %46 = vst.msk [vmem:[#allocation0] sm:$0x1] %vm45_vm7, %v44_v22  }
  0x82   :  { %52 = vst.msk [vmem:[#allocation0] sm:$0x1] %vm51_vm8, %v50_v23  }
  0x84   :  { %v56_v24 = vpop.permute.xlu0 %55   ;;  %v62_v25 = vpop.permute.xlu1 %61  }
  0x85   :  { %58 = vst.msk [vmem:[#allocation0] sm:$0x1] %vm57_vm9, %v56_v24  }
  0x86   :  { %64 = vst.msk [vmem:[#allocation0] sm:$0x1] %vm63_vm10, %v62_v25  }
  0x88   :  { %v68_v26 = vpop.permute.xlu0 %67   ;;  %v74_v27 = vpop.permute.xlu1 %73  }
  0x89   :  { %70 = vst.msk [vmem:[#allocation0] sm:$0x1] %vm69_vm11, %v68_v26  }
  0x8a   :  { %76 = vst.msk [vmem:[#allocation0] sm:$0x1] %vm75_vm12, %v74_v27  }
  0x8c   :  { %v80_v28 = vpop.permute.xlu0 %79   ;;  %v86_v29 = vpop.permute.xlu1 %85  }
  0x8d   :  { %82 = vst.msk [vmem:[#allocation0] sm:$0x1] %vm81_vm13, %v80_v28  }
  0x8e   :  { %88 = vst.msk [vmem:[#allocation0] sm:$0x1] %vm87_vm14, %v86_v29  }
  0x90   :  { %v92_v30 = vpop.permute.xlu0 %91  }
  0x91   :  { %94 = vst.msk [vmem:[#allocation0] sm:$0x1] %vm93_vm15, %v92_v30  }
  0x98   :  { %v98_v31 = vld [vmem:[#allocation0] sm:$0x1] }
  0x99   :  { %100 = vst [vmem:[%s208_s1] sm:$0x1] %v98_v31 }

// kernel: patch_recovery_forward.3
= control target key start
LH: loop header
LB: loop body
LE: loop exit
PB: predicated region body
PF: predicated region fallthrough
CT: control target
= control target key end

     0   :  { %vm52_vm0 = vcmask 261120   ;;  %s215_s1 = inlined_call_operand.vmem [shape: bf16[32,128], index: 1, kind: input, shape index: {}]   ;;  %s216_s0 = inlined_call_operand.vmem [shape: bf16[32,32], index: 0, kind: input, shape index: {}]   ;;  %s217_s2 = inlined_call_operand.vmem [shape: f32[1,128], index: 2, kind: input, shape index: {}]   ;;  %s218_s3 = inlined_call_operand.vmem [shape: bf16[32,128], index: 3, kind: output, shape index: {}]  }
   0x1   :  { %v170_v0 = vld [vmem:[%s215_s1] sm:$0xff]   ;;  %v171_v1 = vld [vmem:[%s215_s1 + $0x8] sm:$0xff]  }
   0x2   :  { %162 = vmatprep.subr.bf16.mxu0 %v170_v0  ;;  %v172_v2 = vld [vmem:[%s216_s0] sm:$0xff]   ;;  %v173_v3 = vld [vmem:[%s216_s0 + $0x8] sm:$0xff]  }
   0x3   :  { %163 = vmatpush3.bf16.msra.mxu0 %v170_v0  ;;  %166 = vmatprep.mubr.msk.bf16.mxu0 %vm52_vm0, %v172_v2  ;;  %v132_v5 = vld [vmem:[%s217_s2] ss:$0 sm:$0xff] }
   0x4   :  { %164 = vmatprep.subr.bf16.mxu0 %v171_v1 }
   0x7   :  { %165 = vmatpush3.bf16.msra.mxu0 %v171_v1 }
   0xa   :  { %167 = vmatmul.mubr.msk.bf16.vlgmr.msra.gmra.mrb[0].mxu0 %vm52_vm0, %v173_v3 }
  0xdd   :  { %v168_v4 = vpop.f32.mrb[0].mxu0 }
  0xde   :  { %v93_v6 = vpop.f32.mrb[1].mxu0  ;;  %v102_v8 = vadd.f32 %v168_v4, %v132_v5 }
  0xdf   :  { %v169_v7 = vpop.f32.mrb[2].mxu0  ;;  %v94_v11 = vadd.f32 %v132_v5, %v93_v6 }
  0xe0   :  { %v105_v9 = vadd.f32 %v169_v7, %v132_v5  ;;  %v96_v10 = vpop.f32.mrb[3].mxu0 }
  0xe1   :  { %v97_v12 = vadd.f32 %v132_v5, %v96_v10 }
  0xe2   :  { %v155_v13 = vpack.c.bf16 %v105_v9, %v102_v8 }
  0xe3   :  { %v150_v14 = vpack.c.bf16 %v97_v12, %v94_v11 }
  0xe4   :  { %157 = vst [vmem:[%s218_s3 + $0x8] sm:$0xff] %v155_v13  }
  0xe5   :  { %151 = vst [vmem:[%s218_s3] sm:$0xff] %v150_v14  }

</bundles_post_ra>
